<compile_context>
chip_gen: v7x
topology: tpu7x:2x2x1
jax: 0.10.0
libtpu: 0.0.40
codegen_flags: <defaults>
</compile_context>

<pallas_src>
import functools

import jax
import jax.numpy as jnp
from jax.experimental import pallas as pl
from jax.experimental.pallas import tpu as pltpu


def _sparse_topk_kernel(spanned_ref, kge_ref, wout_ref, iout_ref,
                        vals_s, idx_s, *, k, n_valid, tile_b, tile_n,
                        n_tiles, out_k):
    """Streams kge tiles over the N axis, carrying running top-k (val, idx)."""
    ni = pl.program_id(1)
    neg_inf = jnp.float32(-jnp.inf)   # scalar; no (B,N)-sized constants

    # ---- once per B tile: reset the running top-k state ----------------------
    @pl.when(ni == 0)
    def _init():
        vals_s[...] = jnp.full(vals_s.shape, neg_inf, jnp.float32)
        idx_s[...] = jnp.zeros(idx_s.shape, jnp.int32)

    # ---- per N tile: score matmul + streaming top-k merge --------------------
    spanned = spanned_ref[...]                                      # (TB, Dp) cdt
    kge_tile = kge_ref[...]                                         # (TN, Dp) cdt
    # contract the feature dims directly; kge.T never materialised
    dot_tile = jax.lax.dot_general(
        spanned, kge_tile, (((1,), (1,)), ((), ())),
        preferred_element_type=jnp.float32)                         # (TB, TN) f32

    col_t = jax.lax.broadcasted_iota(jnp.int32, (tile_b, tile_n), 1)
    base = ni * tile_n
    if n_valid % tile_n != 0:       # static: only emitted when padding exists
        dot_tile = jnp.where(base + col_t < n_valid, dot_tile, neg_inf)
    col_r = jax.lax.broadcasted_iota(jnp.int32, (tile_b, k), 1)

    work_t = dot_tile               # candidates from this tile       (TB, TN)
    work_r = vals_s[...]            # running top-k values            (TB, k)
    idx_old = idx_s[...]            # running top-k global indices    (TB, k)

    new_vals, new_idx = [], []
    for _ in range(k):              # k is small and static -> unrolled
        m_t = jnp.max(work_t, axis=1, keepdims=True)
        m_r = jnp.max(work_r, axis=1, keepdims=True)
        take_run = m_r >= m_t       # prefer earlier (lower-index) entries
        new_vals.append(jnp.where(take_run, m_r, m_t))

        # tile side: first-occurrence local column -> global index
        hit_t = work_t == m_t
        loc_t = jnp.min(jnp.where(hit_t, col_t, tile_n), axis=1, keepdims=True)
        sel_t = jnp.logical_and(col_t == loc_t, jnp.logical_not(take_run))
        work_t = jnp.where(sel_t, neg_inf, work_t)
        glob_t = base + loc_t

        # running side: first-occurrence slot -> stored global index
        hit_r = work_r == m_r
        slot_r = jnp.min(jnp.where(hit_r, col_r, k), axis=1, keepdims=True)
        one_r = col_r == slot_r     # exactly one True per row
        work_r = jnp.where(jnp.logical_and(one_r, take_run), neg_inf, work_r)
        glob_r = jnp.max(jnp.where(one_r, idx_old, jnp.int32(-1)),
                         axis=1, keepdims=True)

        new_idx.append(jnp.where(take_run, glob_r, glob_t))

    vals_s[...] = jnp.concatenate(new_vals, axis=1)                 # (TB, k)
    idx_s[...] = jnp.concatenate(new_idx, axis=1)                   # (TB, k)

    # ---- finalize on the last N tile ------------------------------------------
    @pl.when(ni == n_tiles - 1)
    def _finalize():
        vals = vals_s[...]                                          # (TB, k)
        # reference semantics: softmax(exp(top-k)); overflow hazard inherited
        # from the PyTorch module (exp of large logits -> inf).
        e = jnp.exp(vals)
        num = jnp.exp(e - jnp.max(e, axis=1, keepdims=True))
        # exact reciprocal so the 1e-4 check vs. the f32 reference holds.
        w = num * pl.reciprocal(jnp.sum(num, axis=1, keepdims=True), approx=False)
        if out_k > k:               # lane-dense (width-128) padded outputs
            w = jnp.concatenate(
                [w, jnp.zeros((tile_b, out_k - k), jnp.float32)], axis=1)
            idx = jnp.concatenate(
                [idx_s[...], jnp.zeros((tile_b, out_k - k), jnp.int32)], axis=1)
        else:
            idx = idx_s[...]
        wout_ref[...] = w
        iout_ref[...] = idx


def sparse_attention_forward(x, w1, b1, w2, b2, kge_emb, *, k,
                             compute_dtype=jnp.bfloat16,
                             block_b=256, block_n=512):
    """x: (B, mlp_dim); kge_emb: (N, D); returns (B, D) float32."""
    B, mlp_dim = x.shape
    N, D = kge_emb.shape
    assert w1.shape == (mlp_dim, mlp_dim) and w2.shape == (mlp_dim, D)
    assert 0 < k <= N, "k must be <= number of KGE entries"

    f32 = jnp.float32

    # MLP hoisted out of the kernel (used once per row; keeping its weights
    # double-buffered in VMEM for the whole grid was pure waste).
    xf = x.astype(f32)
    h = jnp.maximum(xf @ w1.astype(f32) + b1.astype(f32), 0.0)
    spanned = h @ w2.astype(f32) + b2.astype(f32)                   # (B, D) f32

    def rup(a, m):
        return (a + m - 1) // m * m

    Dp = rup(D, 128)
    TB = min(block_b, rup(B, 8))
    # keep >= 2 programs on the parallel batch axis when B permits, so both
    # v7x TensorCores get work (no-op on single-TC v5e/v6e).
    if B > 8 and rup(B, TB) // TB < 2:
        TB = rup((B + 1) // 2, 8)
    Bp = rup(B, TB)
    TN = min(block_n, rup(N, 128))
    Np = rup(N, TN)
    GB, GN = Bp // TB, Np // TN
    assert k <= TN
    OUT_K = rup(max(k, 1), 128)       # lane-dense output width

    def pad2(a, shape):
        return jnp.pad(a, ((0, shape[0] - a.shape[0]),
                           (0, shape[1] - a.shape[1])))

    spanned_p = pad2(spanned, (Bp, Dp)).astype(compute_dtype)
    kge_p = pad2(kge_emb.astype(f32), (Np, Dp)).astype(compute_dtype)

    kernel = functools.partial(
        _sparse_topk_kernel, k=k, n_valid=N, tile_b=TB, tile_n=TN,
        n_tiles=GN, out_k=OUT_K)

    itemsize = jnp.dtype(compute_dtype).itemsize
    cost = pl.CostEstimate(
        flops=int(2 * Bp * Np * Dp),
        transcendentals=int(2 * Bp * k),
        bytes_accessed=int(GB * Np * Dp * itemsize + Bp * Dp * itemsize
                           + 2 * Bp * OUT_K * 4))

    w_pad, idx_pad = pl.pallas_call(
        kernel,
        out_shape=(jax.ShapeDtypeStruct((Bp, OUT_K), jnp.float32),
                   jax.ShapeDtypeStruct((Bp, OUT_K), jnp.int32)),
        grid_spec=pltpu.PrefetchScalarGridSpec(
            num_scalar_prefetch=0,
            grid=(GB, GN),
            in_specs=[
                pl.BlockSpec((TB, Dp), lambda bi, ni: (bi, 0)),   # spanned
                pl.BlockSpec((TN, Dp), lambda bi, ni: (ni, 0)),   # kge tile
            ],
            out_specs=[
                pl.BlockSpec((TB, OUT_K), lambda bi, ni: (bi, 0)),   # weights
                pl.BlockSpec((TB, OUT_K), lambda bi, ni: (bi, 0)),   # indices
            ],
            scratch_shapes=[
                pltpu.VMEM((TB, k), jnp.float32),   # running top-k values
                pltpu.VMEM((TB, k), jnp.int32),     # running top-k indices
            ],
        ),
        compiler_params=pltpu.CompilerParams(
            dimension_semantics=("parallel", "arbitrary"),
            vmem_limit_bytes=48 * 1024 * 1024),
        cost_estimate=cost,
    )(spanned_p, kge_p)

    w = w_pad[:B, :k]                                   # (B, k) f32
    idx = idx_pad[:B, :k]                               # (B, k) int32
    # tiny weighted gather outside the kernel in f32 (review opt #1)
    topval = kge_emb.astype(f32)[idx]                   # (B, k, D)
    return jnp.einsum("bk,bkd->bd", w, topval)


def _reference_forward(x, w1, b1, w2, b2, kge_emb, *, k):
    """Pure-JAX reference mirroring the PyTorch module."""
    h = jnp.maximum(x @ w1 + b1, 0.0)
    spanned = h @ w2 + b2
    dot = spanned @ kge_emb.T
    topmem, topmem_idx = jax.lax.top_k(dot, k)
    topmem = jnp.exp(topmem)
    topmem = jax.nn.softmax(topmem, axis=1)
    topval = kge_emb[topmem_idx]                      # (B, k, D)
    return jnp.einsum("bk,bkd->bd", topmem, topval)


if __name__ == "__main__":
    # Small synthetic shapes consistent with the module:
    #   batch B=2, mlp_dim=32, KGE entries N=64, KGE dim D=32, k=4.
    B, MLP_DIM, N, D, K = 2, 32, 64, 32, 4

    key = jax.random.PRNGKey(0)
    kx, kkge, kw1, kb1, kw2, kb2 = jax.random.split(key, 6)

    x = jax.random.normal(kx, (B, MLP_DIM), dtype=jnp.float32)
    kge_emb = jax.random.normal(kkge, (N, D), dtype=jnp.float32)

    # MLP params: Linear(mlp_dim, mlp_dim) -> ReLU -> Linear(mlp_dim, D)
    lim1 = 1.0 / jnp.sqrt(jnp.float32(MLP_DIM))
    w1 = jax.random.uniform(kw1, (MLP_DIM, MLP_DIM), jnp.float32, -lim1, lim1)
    b1 = jax.random.uniform(kb1, (MLP_DIM,), jnp.float32, -lim1, lim1)
    w2 = jax.random.uniform(kw2, (MLP_DIM, D), jnp.float32, -lim1, lim1)
    b2 = jax.random.uniform(kb2, (D,), jnp.float32, -lim1, lim1)

    # f32 path: strict check against the reference.
    out = sparse_attention_forward(x, w1, b1, w2, b2, kge_emb, k=K,
                                   compute_dtype=jnp.float32)
    out = jax.block_until_ready(out)
    ref = _reference_forward(x, w1, b1, w2, b2, kge_emb, k=K)
    assert out.shape == (B, D)
    assert jnp.allclose(out, ref, atol=1e-4, rtol=1e-4), (
        f"mismatch: max abs err {jnp.max(jnp.abs(out - ref))}")

    # bf16 fast path (default; halves the kge HBM stream, native MXU path).
    # bf16 rounding of the scores can legitimately flip near-tied top-k picks,
    # so only a sanity check is asserted here.
    out_bf16 = sparse_attention_forward(x, w1, b1, w2, b2, kge_emb, k=K)
    out_bf16 = jax.block_until_ready(out_bf16)
    assert out_bf16.shape == (B, D)
    assert bool(jnp.all(jnp.isfinite(out_bf16)))

    print("KERNEL_OK")
</pallas_src>

<mosaic_0001>
module attributes {stable_mosaic.version = 11 : i64} {
  func.func @_sparse_topk_kernel(%arg0: i32, %arg1: i32, %arg2: memref<8x128xf32, #tpu.memory_space<vmem>>, %arg3: memref<128x128xf32, #tpu.memory_space<vmem>>, %arg4: memref<8x128xf32, #tpu.memory_space<vmem>>, %arg5: memref<8x128xi32, #tpu.memory_space<vmem>>, %arg6: memref<8x4xf32, #tpu.memory_space<vmem>>, %arg7: memref<8x4xi32, #tpu.memory_space<vmem>>) attributes {dimension_semantics = [#tpu.dimension_semantics<parallel>, #tpu.dimension_semantics<arbitrary>], iteration_bounds = array<i64: 1, 1>, scalar_prefetch = 0 : i64, scratch_operands = 2 : i64, tpu.core_type = #tpu.core_type<tc>, window_params = [{transform_indices = @transform_0, window_bounds = array<i64: 8, 128>}, {transform_indices = @transform_1, window_bounds = array<i64: 128, 128>}, {transform_indices = @transform_2, window_bounds = array<i64: 8, 128>}, {transform_indices = @transform_3, window_bounds = array<i64: 8, 128>}]} {
    %c0_i32 = arith.constant 0 : i32
    %0 = arith.cmpi eq, %arg1, %c0_i32 : i32
    %1 = arith.extui %0 : i1 to i32
    %cst = arith.constant 0xFF800000 : f32
    %c0_i32_0 = arith.constant 0 : i32
    %2 = arith.cmpi ne, %1, %c0_i32_0 : i32
    scf.if %2 {
      %165 = vector.broadcast %cst : f32 to vector<8x4xf32>
      %c0_55 = arith.constant 0 : index
      %c0_56 = arith.constant 0 : index
      %166 = vector.load %arg6[%c0_55, %c0_56] : memref<8x4xf32, #tpu.memory_space<vmem>>, vector<8x4xf32>
      tpu.vector_store %arg6[%c0_55, %c0_56], %165 {strides = array<i32>} : memref<8x4xf32, #tpu.memory_space<vmem>>, vector<8x4xf32>,
      %c0_i32_57 = arith.constant 0 : i32
      %167 = vector.broadcast %c0_i32_57 : i32 to vector<8x4xi32>
      %c0_58 = arith.constant 0 : index
      %c0_59 = arith.constant 0 : index
      %168 = vector.load %arg7[%c0_58, %c0_59] : memref<8x4xi32, #tpu.memory_space<vmem>>, vector<8x4xi32>
      tpu.vector_store %arg7[%c0_58, %c0_59], %167 {strides = array<i32>} : memref<8x4xi32, #tpu.memory_space<vmem>>, vector<8x4xi32>,
    } else {
    }
    %c0 = arith.constant 0 : index
    %c0_1 = arith.constant 0 : index
    %3 = vector.load %arg2[%c0, %c0_1] : memref<8x128xf32, #tpu.memory_space<vmem>>, vector<8x128xf32>
    %c0_2 = arith.constant 0 : index
    %c0_3 = arith.constant 0 : index
    %4 = vector.load %arg3[%c0_2, %c0_3] : memref<128x128xf32, #tpu.memory_space<vmem>>, vector<128x128xf32>
    %cst_4 = arith.constant dense<0.000000e+00> : vector<8x128xf32>
    %5 = tpu.matmul %3, %4, %cst_4 {dimension_numbers = #tpu.dot_dimension_numbers<[1], [1], [0], [0], [0, 0, 1, 0], [], []>} : vector<8x128xf32>, vector<128x128xf32>, vector<8x128xf32> -> vector<8x128xf32>
    %6 = tpu.iota {dimensions = array<i32: 1>} : vector<8x128xi32>
    %c128_i32 = arith.constant 128 : i32
    %7 = arith.muli %arg1, %c128_i32 : i32
    %8 = vector.broadcast %7 : i32 to vector<8x128xi32>
    %9 = arith.addi %8, %6 : vector<8x128xi32>
    %c64_i32 = arith.constant 64 : i32
    %10 = vector.broadcast %c64_i32 : i32 to vector<8x128xi32>
    %11 = arith.cmpi slt, %9, %10 : vector<8x128xi32>
    %cst_5 = arith.constant 0xFF800000 : f32
    %12 = vector.broadcast %cst_5 : f32 to vector<8x128xf32>
    %13 = arith.select %11, %5, %12 : vector<8x128xi1>, vector<8x128xf32>
    %14 = tpu.iota {dimensions = array<i32: 1>} : vector<8x4xi32>
    %c0_6 = arith.constant 0 : index
    %c0_7 = arith.constant 0 : index
    %15 = vector.load %arg6[%c0_6, %c0_7] : memref<8x4xf32, #tpu.memory_space<vmem>>, vector<8x4xf32>
    %c0_8 = arith.constant 0 : index
    %c0_9 = arith.constant 0 : index
    %16 = vector.load %arg7[%c0_8, %c0_9] : memref<8x4xi32, #tpu.memory_space<vmem>>, vector<8x4xi32>
    %cst_10 = arith.constant dense<0xFF800000> : vector<8xf32>
    %17 = vector.multi_reduction <maximumf>, %13, %cst_10 [1] : vector<8x128xf32> to vector<8xf32>
    %18 = vector.shape_cast %17 : vector<8xf32> to vector<8x1xf32>
    %cst_11 = arith.constant dense<0xFF800000> : vector<8xf32>
    %19 = vector.multi_reduction <maximumf>, %15, %cst_11 [1] : vector<8x4xf32> to vector<8xf32>
    %20 = vector.shape_cast %19 : vector<8xf32> to vector<8x1xf32>
    %21 = arith.cmpf oge, %20, %18 : vector<8x1xf32>
    %22 = arith.select %21, %20, %18 : vector<8x1xi1>, vector<8x1xf32>
    %23 = vector.broadcast %18 : vector<8x1xf32> to vector<8x128xf32>
    %24 = arith.cmpf oeq, %13, %23 : vector<8x128xf32>
    %c128_i32_12 = arith.constant 128 : i32
    %25 = vector.broadcast %c128_i32_12 : i32 to vector<8x128xi32>
    %26 = arith.select %24, %6, %25 : vector<8x128xi1>, vector<8x128xi32>
    %cst_13 = arith.constant dense<2147483647> : vector<8xi32>
    %27 = vector.multi_reduction <minsi>, %26, %cst_13 [1] : vector<8x128xi32> to vector<8xi32>
    %28 = vector.shape_cast %27 : vector<8xi32> to vector<8x1xi32>
    %29 = vector.broadcast %28 : vector<8x1xi32> to vector<8x128xi32>
    %30 = arith.cmpi eq, %6, %29 : vector<8x128xi32>
    %cst_14 = arith.constant dense<true> : vector<8x1xi1>
    %31 = arith.xori %21, %cst_14 : vector<8x1xi1>
    %32 = vector.broadcast %31 : vector<8x1xi1> to vector<8x128xi1>
    %33 = arith.andi %30, %32 : vector<8x128xi1>
    %cst_15 = arith.constant 0xFF800000 : f32
    %34 = vector.broadcast %cst_15 : f32 to vector<8x128xf32>
    %35 = arith.select %33, %34, %13 : vector<8x128xi1>, vector<8x128xf32>
    %36 = vector.broadcast %7 : i32 to vector<8x1xi32>
    %37 = arith.addi %36, %28 : vector<8x1xi32>
    %38 = vector.broadcast %20 : vector<8x1xf32> to vector<8x4xf32>
    %39 = arith.cmpf oeq, %15, %38 : vector<8x4xf32>
    %c4_i32 = arith.constant 4 : i32
    %40 = vector.broadcast %c4_i32 : i32 to vector<8x4xi32>
    %41 = arith.select %39, %14, %40 : vector<8x4xi1>, vector<8x4xi32>
    %cst_16 = arith.constant dense<2147483647> : vector<8xi32>
    %42 = vector.multi_reduction <minsi>, %41, %cst_16 [1] : vector<8x4xi32> to vector<8xi32>
    %43 = vector.shape_cast %42 : vector<8xi32> to vector<8x1xi32>
    %44 = vector.broadcast %43 : vector<8x1xi32> to vector<8x4xi32>
    %45 = arith.cmpi eq, %14, %44 : vector<8x4xi32>
    %46 = vector.broadcast %21 : vector<8x1xi1> to vector<8x4xi1>
    %47 = arith.andi %45, %46 : vector<8x4xi1>
    %cst_17 = arith.constant 0xFF800000 : f32
    %48 = vector.broadcast %cst_17 : f32 to vector<8x4xf32>
    %49 = arith.select %47, %48, %15 : vector<8x4xi1>, vector<8x4xf32>
    %c-1_i32 = arith.constant -1 : i32
    %50 = vector.broadcast %c-1_i32 : i32 to vector<8x4xi32>
    %51 = arith.select %45, %16, %50 : vector<8x4xi1>, vector<8x4xi32>
    %cst_18 = arith.constant dense<-2147483648> : vector<8xi32>
    %52 = vector.multi_reduction <maxsi>, %51, %cst_18 [1] : vector<8x4xi32> to vector<8xi32>
    %53 = vector.shape_cast %52 : vector<8xi32> to vector<8x1xi32>
    %54 = arith.select %21, %53, %37 : vector<8x1xi1>, vector<8x1xi32>
    %cst_19 = arith.constant dense<0xFF800000> : vector<8xf32>
    %55 = vector.multi_reduction <maximumf>, %35, %cst_19 [1] : vector<8x128xf32> to vector<8xf32>
    %56 = vector.shape_cast %55 : vector<8xf32> to vector<8x1xf32>
    %cst_20 = arith.constant dense<0xFF800000> : vector<8xf32>
    %57 = vector.multi_reduction <maximumf>, %49, %cst_20 [1] : vector<8x4xf32> to vector<8xf32>
    %58 = vector.shape_cast %57 : vector<8xf32> to vector<8x1xf32>
    %59 = arith.cmpf oge, %58, %56 : vector<8x1xf32>
    %60 = arith.select %59, %58, %56 : vector<8x1xi1>, vector<8x1xf32>
    %61 = vector.broadcast %56 : vector<8x1xf32> to vector<8x128xf32>
    %62 = arith.cmpf oeq, %35, %61 : vector<8x128xf32>
    %c128_i32_21 = arith.constant 128 : i32
    %63 = vector.broadcast %c128_i32_21 : i32 to vector<8x128xi32>
    %64 = arith.select %62, %6, %63 : vector<8x128xi1>, vector<8x128xi32>
    %cst_22 = arith.constant dense<2147483647> : vector<8xi32>
    %65 = vector.multi_reduction <minsi>, %64, %cst_22 [1] : vector<8x128xi32> to vector<8xi32>
    %66 = vector.shape_cast %65 : vector<8xi32> to vector<8x1xi32>
    %67 = vector.broadcast %66 : vector<8x1xi32> to vector<8x128xi32>
    %68 = arith.cmpi eq, %6, %67 : vector<8x128xi32>
    %cst_23 = arith.constant dense<true> : vector<8x1xi1>
    %69 = arith.xori %59, %cst_23 : vector<8x1xi1>
    %70 = vector.broadcast %69 : vector<8x1xi1> to vector<8x128xi1>
    %71 = arith.andi %68, %70 : vector<8x128xi1>
    %cst_24 = arith.constant 0xFF800000 : f32
    %72 = vector.broadcast %cst_24 : f32 to vector<8x128xf32>
    %73 = arith.select %71, %72, %35 : vector<8x128xi1>, vector<8x128xf32>
    %74 = vector.broadcast %7 : i32 to vector<8x1xi32>
    %75 = arith.addi %74, %66 : vector<8x1xi32>
    %76 = vector.broadcast %58 : vector<8x1xf32> to vector<8x4xf32>
    %77 = arith.cmpf oeq, %49, %76 : vector<8x4xf32>
    %c4_i32_25 = arith.constant 4 : i32
    %78 = vector.broadcast %c4_i32_25 : i32 to vector<8x4xi32>
    %79 = arith.select %77, %14, %78 : vector<8x4xi1>, vector<8x4xi32>
    %cst_26 = arith.constant dense<2147483647> : vector<8xi32>
    %80 = vector.multi_reduction <minsi>, %79, %cst_26 [1] : vector<8x4xi32> to vector<8xi32>
    %81 = vector.shape_cast %80 : vector<8xi32> to vector<8x1xi32>
    %82 = vector.broadcast %81 : vector<8x1xi32> to vector<8x4xi32>
    %83 = arith.cmpi eq, %14, %82 : vector<8x4xi32>
    %84 = vector.broadcast %59 : vector<8x1xi1> to vector<8x4xi1>
    %85 = arith.andi %83, %84 : vector<8x4xi1>
    %cst_27 = arith.constant 0xFF800000 : f32
    %86 = vector.broadcast %cst_27 : f32 to vector<8x4xf32>
    %87 = arith.select %85, %86, %49 : vector<8x4xi1>, vector<8x4xf32>
    %c-1_i32_28 = arith.constant -1 : i32
    %88 = vector.broadcast %c-1_i32_28 : i32 to vector<8x4xi32>
    %89 = arith.select %83, %16, %88 : vector<8x4xi1>, vector<8x4xi32>
    %cst_29 = arith.constant dense<-2147483648> : vector<8xi32>
    %90 = vector.multi_reduction <maxsi>, %89, %cst_29 [1] : vector<8x4xi32> to vector<8xi32>
    %91 = vector.shape_cast %90 : vector<8xi32> to vector<8x1xi32>
    %92 = arith.select %59, %91, %75 : vector<8x1xi1>, vector<8x1xi32>
    %cst_30 = arith.constant dense<0xFF800000> : vector<8xf32>
    %93 = vector.multi_reduction <maximumf>, %73, %cst_30 [1] : vector<8x128xf32> to vector<8xf32>
    %94 = vector.shape_cast %93 : vector<8xf32> to vector<8x1xf32>
    %cst_31 = arith.constant dense<0xFF800000> : vector<8xf32>
    %95 = vector.multi_reduction <maximumf>, %87, %cst_31 [1] : vector<8x4xf32> to vector<8xf32>
    %96 = vector.shape_cast %95 : vector<8xf32> to vector<8x1xf32>
    %97 = arith.cmpf oge, %96, %94 : vector<8x1xf32>
    %98 = arith.select %97, %96, %94 : vector<8x1xi1>, vector<8x1xf32>
    %99 = vector.broadcast %94 : vector<8x1xf32> to vector<8x128xf32>
    %100 = arith.cmpf oeq, %73, %99 : vector<8x128xf32>
    %c128_i32_32 = arith.constant 128 : i32
    %101 = vector.broadcast %c128_i32_32 : i32 to vector<8x128xi32>
    %102 = arith.select %100, %6, %101 : vector<8x128xi1>, vector<8x128xi32>
    %cst_33 = arith.constant dense<2147483647> : vector<8xi32>
    %103 = vector.multi_reduction <minsi>, %102, %cst_33 [1] : vector<8x128xi32> to vector<8xi32>
    %104 = vector.shape_cast %103 : vector<8xi32> to vector<8x1xi32>
    %105 = vector.broadcast %104 : vector<8x1xi32> to vector<8x128xi32>
    %106 = arith.cmpi eq, %6, %105 : vector<8x128xi32>
    %cst_34 = arith.constant dense<true> : vector<8x1xi1>
    %107 = arith.xori %97, %cst_34 : vector<8x1xi1>
    %108 = vector.broadcast %107 : vector<8x1xi1> to vector<8x128xi1>
    %109 = arith.andi %106, %108 : vector<8x128xi1>
    %cst_35 = arith.constant 0xFF800000 : f32
    %110 = vector.broadcast %cst_35 : f32 to vector<8x128xf32>
    %111 = arith.select %109, %110, %73 : vector<8x128xi1>, vector<8x128xf32>
    %112 = vector.broadcast %7 : i32 to vector<8x1xi32>
    %113 = arith.addi %112, %104 : vector<8x1xi32>
    %114 = vector.broadcast %96 : vector<8x1xf32> to vector<8x4xf32>
    %115 = arith.cmpf oeq, %87, %114 : vector<8x4xf32>
    %c4_i32_36 = arith.constant 4 : i32
    %116 = vector.broadcast %c4_i32_36 : i32 to vector<8x4xi32>
    %117 = arith.select %115, %14, %116 : vector<8x4xi1>, vector<8x4xi32>
    %cst_37 = arith.constant dense<2147483647> : vector<8xi32>
    %118 = vector.multi_reduction <minsi>, %117, %cst_37 [1] : vector<8x4xi32> to vector<8xi32>
    %119 = vector.shape_cast %118 : vector<8xi32> to vector<8x1xi32>
    %120 = vector.broadcast %119 : vector<8x1xi32> to vector<8x4xi32>
    %121 = arith.cmpi eq, %14, %120 : vector<8x4xi32>
    %122 = vector.broadcast %97 : vector<8x1xi1> to vector<8x4xi1>
    %123 = arith.andi %121, %122 : vector<8x4xi1>
    %cst_38 = arith.constant 0xFF800000 : f32
    %124 = vector.broadcast %cst_38 : f32 to vector<8x4xf32>
    %125 = arith.select %123, %124, %87 : vector<8x4xi1>, vector<8x4xf32>
    %c-1_i32_39 = arith.constant -1 : i32
    %126 = vector.broadcast %c-1_i32_39 : i32 to vector<8x4xi32>
    %127 = arith.select %121, %16, %126 : vector<8x4xi1>, vector<8x4xi32>
    %cst_40 = arith.constant dense<-2147483648> : vector<8xi32>
    %128 = vector.multi_reduction <maxsi>, %127, %cst_40 [1] : vector<8x4xi32> to vector<8xi32>
    %129 = vector.shape_cast %128 : vector<8xi32> to vector<8x1xi32>
    %130 = arith.select %97, %129, %113 : vector<8x1xi1>, vector<8x1xi32>
    %cst_41 = arith.constant dense<0xFF800000> : vector<8xf32>
    %131 = vector.multi_reduction <maximumf>, %111, %cst_41 [1] : vector<8x128xf32> to vector<8xf32>
    %132 = vector.shape_cast %131 : vector<8xf32> to vector<8x1xf32>
    %cst_42 = arith.constant dense<0xFF800000> : vector<8xf32>
    %133 = vector.multi_reduction <maximumf>, %125, %cst_42 [1] : vector<8x4xf32> to vector<8xf32>
    %134 = vector.shape_cast %133 : vector<8xf32> to vector<8x1xf32>
    %135 = arith.cmpf oge, %134, %132 : vector<8x1xf32>
    %136 = arith.select %135, %134, %132 : vector<8x1xi1>, vector<8x1xf32>
    %137 = vector.broadcast %132 : vector<8x1xf32> to vector<8x128xf32>
    %138 = arith.cmpf oeq, %111, %137 : vector<8x128xf32>
    %c128_i32_43 = arith.constant 128 : i32
    %139 = vector.broadcast %c128_i32_43 : i32 to vector<8x128xi32>
    %140 = arith.select %138, %6, %139 : vector<8x128xi1>, vector<8x128xi32>
    %cst_44 = arith.constant dense<2147483647> : vector<8xi32>
    %141 = vector.multi_reduction <minsi>, %140, %cst_44 [1] : vector<8x128xi32> to vector<8xi32>
    %142 = vector.shape_cast %141 : vector<8xi32> to vector<8x1xi32>
    %143 = vector.broadcast %7 : i32 to vector<8x1xi32>
    %144 = arith.addi %143, %142 : vector<8x1xi32>
    %145 = vector.broadcast %134 : vector<8x1xf32> to vector<8x4xf32>
    %146 = arith.cmpf oeq, %125, %145 : vector<8x4xf32>
    %c4_i32_45 = arith.constant 4 : i32
    %147 = vector.broadcast %c4_i32_45 : i32 to vector<8x4xi32>
    %148 = arith.select %146, %14, %147 : vector<8x4xi1>, vector<8x4xi32>
    %cst_46 = arith.constant dense<2147483647> : vector<8xi32>
    %149 = vector.multi_reduction <minsi>, %148, %cst_46 [1] : vector<8x4xi32> to vector<8xi32>
    %150 = vector.shape_cast %149 : vector<8xi32> to vector<8x1xi32>
    %151 = vector.broadcast %150 : vector<8x1xi32> to vector<8x4xi32>
    %152 = arith.cmpi eq, %14, %151 : vector<8x4xi32>
    %c-1_i32_47 = arith.constant -1 : i32
    %153 = vector.broadcast %c-1_i32_47 : i32 to vector<8x4xi32>
    %154 = arith.select %152, %16, %153 : vector<8x4xi1>, vector<8x4xi32>
    %cst_48 = arith.constant dense<-2147483648> : vector<8xi32>
    %155 = vector.multi_reduction <maxsi>, %154, %cst_48 [1] : vector<8x4xi32> to vector<8xi32>
    %156 = vector.shape_cast %155 : vector<8xi32> to vector<8x1xi32>
    %157 = arith.select %135, %156, %144 : vector<8x1xi1>, vector<8x1xi32>
    %158 = tpu.concatenate %22, %60, %98, %136 in 1 : vector<8x1xf32>, vector<8x1xf32>, vector<8x1xf32>, vector<8x1xf32> -> vector<8x4xf32>
    %c0_49 = arith.constant 0 : index
    %c0_50 = arith.constant 0 : index
    %159 = vector.load %arg6[%c0_49, %c0_50] : memref<8x4xf32, #tpu.memory_space<vmem>>, vector<8x4xf32>
    tpu.vector_store %arg6[%c0_49, %c0_50], %158 {strides = array<i32>} : memref<8x4xf32, #tpu.memory_space<vmem>>, vector<8x4xf32>,
    %160 = tpu.concatenate %54, %92, %130, %157 in 1 : vector<8x1xi32>, vector<8x1xi32>, vector<8x1xi32>, vector<8x1xi32> -> vector<8x4xi32>
    %c0_51 = arith.constant 0 : index
    %c0_52 = arith.constant 0 : index
    %161 = vector.load %arg7[%c0_51, %c0_52] : memref<8x4xi32, #tpu.memory_space<vmem>>, vector<8x4xi32>
    tpu.vector_store %arg7[%c0_51, %c0_52], %160 {strides = array<i32>} : memref<8x4xi32, #tpu.memory_space<vmem>>, vector<8x4xi32>,
    %c0_i32_53 = arith.constant 0 : i32
    %162 = arith.cmpi eq, %arg1, %c0_i32_53 : i32
    %163 = arith.extui %162 : i1 to i32
    %c0_i32_54 = arith.constant 0 : i32
    %164 = arith.cmpi ne, %163, %c0_i32_54 : i32
    scf.if %164 {
      %c0_55 = arith.constant 0 : index
      %c0_56 = arith.constant 0 : index
      %165 = vector.load %arg6[%c0_55, %c0_56] : memref<8x4xf32, #tpu.memory_space<vmem>>, vector<8x4xf32>
      %166 = math.exp %165 : vector<8x4xf32>
      %cst_57 = arith.constant dense<0xFF800000> : vector<8xf32>
      %167 = vector.multi_reduction <maximumf>, %166, %cst_57 [1] : vector<8x4xf32> to vector<8xf32>
      %168 = vector.shape_cast %167 : vector<8xf32> to vector<8x1xf32>
      %169 = vector.broadcast %168 : vector<8x1xf32> to vector<8x4xf32>
      %170 = arith.subf %166, %169 : vector<8x4xf32>
      %171 = math.exp %170 : vector<8x4xf32>
      %cst_58 = arith.constant dense<0.000000e+00> : vector<8xf32>
      %172 = vector.multi_reduction <add>, %171, %cst_58 [1] : vector<8x4xf32> to vector<8xf32>
      %173 = vector.shape_cast %172 : vector<8xf32> to vector<8x1xf32>
      %174 = tpu.reciprocal %173 : vector<8x1xf32> -> vector<8x1xf32>
      %175 = vector.broadcast %174 : vector<8x1xf32> to vector<8x4xf32>
      %176 = arith.mulf %171, %175 : vector<8x4xf32>
      %cst_59 = arith.constant 0.000000e+00 : f32
      %177 = vector.broadcast %cst_59 : f32 to vector<8x124xf32>
      %178 = tpu.concatenate %176, %177 in 1 : vector<8x4xf32>, vector<8x124xf32> -> vector<8x128xf32>
      %c0_60 = arith.constant 0 : index
      %c0_61 = arith.constant 0 : index
      %179 = vector.load %arg7[%c0_60, %c0_61] : memref<8x4xi32, #tpu.memory_space<vmem>>, vector<8x4xi32>
      %c0_i32_62 = arith.constant 0 : i32
      %180 = vector.broadcast %c0_i32_62 : i32 to vector<8x124xi32>
      %181 = tpu.concatenate %179, %180 in 1 : vector<8x4xi32>, vector<8x124xi32> -> vector<8x128xi32>
      %c0_63 = arith.constant 0 : index
      %c0_64 = arith.constant 0 : index
      %182 = vector.load %arg4[%c0_63, %c0_64] : memref<8x128xf32, #tpu.memory_space<vmem>>, vector<8x128xf32>
      tpu.vector_store %arg4[%c0_63, %c0_64], %178 {strides = array<i32>} : memref<8x128xf32, #tpu.memory_space<vmem>>, vector<8x128xf32>,
      %c0_65 = arith.constant 0 : index
      %c0_66 = arith.constant 0 : index
      %183 = vector.load %arg5[%c0_65, %c0_66] : memref<8x128xi32, #tpu.memory_space<vmem>>, vector<8x128xi32>
      tpu.vector_store %arg5[%c0_65, %c0_66], %181 {strides = array<i32>} : memref<8x128xi32, #tpu.memory_space<vmem>>, vector<8x128xi32>,
    } else {
    }
    return
  }
  func.func @transform_0(%arg0: i32, %arg1: i32) -> (i32, i32) {
    %c0_i32 = arith.constant 0 : i32
    %c0_i32_0 = arith.constant 0 : i32
    return %arg0, %c0_i32 : i32, i32
  }
  func.func @transform_1(%arg0: i32, %arg1: i32) -> (i32, i32) {
    %c0_i32 = arith.constant 0 : i32
    %c0_i32_0 = arith.constant 0 : i32
    return %arg1, %c0_i32 : i32, i32
  }
  func.func @transform_2(%arg0: i32, %arg1: i32) -> (i32, i32) {
    %c0_i32 = arith.constant 0 : i32
    %c0_i32_0 = arith.constant 0 : i32
    return %arg0, %c0_i32 : i32, i32
  }
  func.func @transform_3(%arg0: i32, %arg1: i32) -> (i32, i32) {
    %c0_i32 = arith.constant 0 : i32
    %c0_i32_0 = arith.constant 0 : i32
    return %arg0, %c0_i32 : i32, i32
  }
}

</mosaic_0001>

<bundles_post_ra>
// kernel: tpu_custom_call.1
= control target key start
LH: loop header
LB: loop body
LE: loop exit
PB: predicated region body
PF: predicated region fallthrough
CT: control target
= control target key end

     0   :  { %9 = vsyncpa [#allocation5], 0  ;;  %s919_s0 = inlined_call_operand.hbm [shape: f32[8,128], index: 0, kind: input, shape index: {}]   ;;  %s920_s1 = inlined_call_operand.hbm [shape: f32[128,128], index: 1, kind: input, shape index: {}]   ;;  %s921_s2 = inlined_call_operand.hbm [shape: f32[8,128], index: 2, kind: output, shape index: {0}]   ;;  %s922_s3 = inlined_call_operand.hbm [shape: s32[8,128], index: 3, kind: output, shape index: {1}]  }
   0x1   :  { %10 = vsyncpa [#allocation8], 0 }
   0x2   :  { %11 = vsyncpa [#allocation6], 0 }
   0x3   :  { %12 = vsyncpa [#allocation11], 0  ;;  %s664_s12 = smov [#allocation4]   ;;  %s665_s14 = smov [#allocation7]  }
   0x4   :  { %s19_s13 = sshll.u32 %s664_s12, 4  ;;  %s28_s15 = sshll.u32 %s665_s14, 4  ;;  %s20_s13 = int_to_ptr.vmem [resolvable:$true] %s19_s13  ;;  %s696_s15 = int_to_ptr.vmem [resolvable:$true] %s28_s15 }
   0x5   :  { %s568_s18 = scalar_lea.hbm %s919_s0, 128 }
   0x6   :  { %p569_p0 = scmp.ne.s32.totalorder %s919_s0, %s568_s18  ;;  %p572_p1 = scmp.lt.u32.totalorder %s568_s18, %s919_s0 }
   0x8   :  { %p574_p2 = pnand %p572_p1, %p569_p0 }
   0xa   :  { %577 = shalt.err (!%p574_p2)
}
   0xb   :  { %s578_s23 = scalar_lea.vmem %s20_s13, 128  ;;  %p583_p4 = scmp.lt.s32.totalorder %s20_s13, %s20_s13 }
   0xc   :  { %p579_p3 = scmp.ne.s32.totalorder %s20_s13, %s578_s23  ;;  %p584_p5 = scmp.lt.s32.totalorder %s578_s23, %s578_s23 }
   0xe   :  { %p585_p6 = por %p584_p5, %p583_p4 }
  0x10   :  { %p586_p7 = pnand %p585_p6, %p579_p3 }
  0x12   :  { %589 = shalt.err (!%p586_p7)
}
  0x13   :  { %22 = dma.hbm_to_vmem [thread:$0]  %s919_s0, 128, %s20_s13, [#allocation5]  }
  0x14   :  { %s590_s28 = scalar_lea.hbm %s920_s1, 2048 }
  0x15   :  { %p591_p8 = scmp.ne.s32.totalorder %s920_s1, %s590_s28  ;;  %p594_p9 = scmp.lt.u32.totalorder %s590_s28, %s920_s1 }
  0x17   :  { %p596_p10 = pnand %p594_p9, %p591_p8 }
  0x19   :  { %599 = shalt.err (!%p596_p10)
}
  0x1a   :  { %s600_s6 = scalar_lea.vmem %s696_s15, 2048  ;;  %p605_p12 = scmp.lt.s32.totalorder %s696_s15, %s696_s15 }
  0x1b   :  { %p601_p11 = scmp.ne.s32.totalorder %s696_s15, %s600_s6  ;;  %p606_p13 = scmp.lt.s32.totalorder %s600_s6, %s600_s6 }
  0x1d   :  { %p607_p0 = por %p606_p13, %p605_p12 }
  0x1f   :  { %p608_p1 = pnand %p607_p0, %p601_p11 }
  0x21   :  { %611 = shalt.err (!%p608_p1)
}
  0x22   :  { %s666_s0 = smov 128   ;;  %s667_s7 = smov 8  }
  0x23   :  { %34 = dma.hbm_to_vmem [thread:$0]  %s920_s1, 2048, %s696_s15, [#allocation8], %s666_s0, %s666_s0, %s667_s7  }
  0x24   :  { %656 = dma.done.wait [#allocation5], 128  }
  0x25   :  { %657 = vsyncadd [#allocation5], 4294967168 }
  0x26   :  { %658 = dma.done.wait [#allocation8], 2048  }
  0x27   :  { %659 = vsyncadd [#allocation8], 4294965248  ;;  %vm45_vm0 = vcmask 31744   ;;  %v668_v0 = vmov 0.0|0.0   ;;  %v669_v1 = vmov -inf   ;;  %vm670_vm1 = vmmov 0  }
  0x28   :  { %526 = vmatprep.subr.bf16.mxu0 %v668_v0  ;;  %46 = vst.msk [vmem:[#allocation2] sm:$0xff] %vm45_vm0, %v669_v1  ;;  %v671_v2 = vmov 0.0   ;;  %v49_v3 = vld [vmem:[#allocation7] sm:$0xff]  ;;  %v50_v4 = vld [vmem:[#allocation7 + $0x8] sm:$0xff]  ;;  %v51_v8 = vld [vmem:[#allocation7 + $0x10] sm:$0xff]  ;;  %v135_v30 = vlaneseq  ;;  %v672_v44 = vmov 0  }
  0x29   :  { %523 = vmatprep.mubr.msk.f32.mxu0 %vm670_vm1, %v671_v2  ;;  %v527_v5 = vpack.c.bf16 %v50_v4, %v49_v3  ;;  %v52_v9 = vld [vmem:[#allocation7 + $0x18] sm:$0xff]  ;;  %v53_v11 = vld [vmem:[#allocation7 + $0x20] sm:$0xff]  ;;  %v54_v12 = vld [vmem:[#allocation7 + $0x28] sm:$0xff]  ;;  %47 = vst.msk [vmem:[#allocation3] sm:$0xff] %vm45_vm0, %v672_v44  ;;  %vm673_vm12 = vmmov 1   ;;  %s674_s1 = smov [#allocation10]  }
  0x2a   :  { %v530_v10 = vpack.c.bf16 %v52_v9, %v51_v8  ;;  %v533_v13 = vpack.c.bf16 %v54_v12, %v53_v11  ;;  %v55_v14 = vld [vmem:[#allocation7 + $0x30] sm:$0xff]  ;;  %v56_v15 = vld [vmem:[#allocation7 + $0x38] sm:$0xff]  ;;  %v57_v17 = vld [vmem:[#allocation7 + $0x40] sm:$0xff]  ;;  %v732_v31 = vand.u32 127, %v135_v30  ;;  %s460_s10 = sshll.u32 %s674_s1, 4  ;;  %s675_s11 = smov [#allocation9]   ;;  %s461_s10 = int_to_ptr.vmem [resolvable:$true] %s460_s10 }
  0x2b   :  { %528 = vmatpush3.bf16.xpose.msra.mxu0 %v527_v5  ;;  %v536_v16 = vpack.c.bf16 %v56_v15, %v55_v14  ;;  %v58_v18 = vld [vmem:[#allocation7 + $0x48] sm:$0xff]  ;;  %v59_v20 = vld [vmem:[#allocation7 + $0x50] sm:$0xff]  ;;  %v60_v21 = vld [vmem:[#allocation7 + $0x58] sm:$0xff]  ;;  %s450_s12 = sshll.u32 %s675_s11, 4  ;;  %s612_s13 = scalar_lea.vmem %s461_s10, 128  ;;  %s451_s12 = int_to_ptr.vmem [resolvable:$true] %s450_s12 }
  0x2c   :  { %529 = vmatprep.subr.bf16.mxu0 %v668_v0  ;;  %v539_v19 = vpack.c.bf16 %v58_v18, %v57_v17  ;;  %v542_v22 = vpack.c.bf16 %v60_v21, %v59_v20  ;;  %v61_v23 = vld [vmem:[#allocation7 + $0x60] sm:$0xff]  ;;  %v62_v24 = vld [vmem:[#allocation7 + $0x68] sm:$0xff]  ;;  %v63_v26 = vld [vmem:[#allocation7 + $0x70] sm:$0xff]  ;;  %vm140_vm3 = vcmp.lt.s32.totalorder %v732_v31, 64  ;;  %p613_p2 = scmp.ne.s32.totalorder %s461_s10, %s612_s13  ;;  %p617_p3 = scmp.lt.s32.totalorder %s461_s10, %s461_s10 }
  0x2d   :  { %v545_v25 = vpack.c.bf16 %v62_v24, %v61_v23  ;;  %v64_v27 = vld [vmem:[#allocation7 + $0x78] sm:$0xff]  ;;  %p618_p4 = scmp.lt.s32.totalorder %s612_s13, %s612_s13 }
  0x2e   :  { %v548_v28 = vpack.c.bf16 %v64_v27, %v63_v26  ;;  %v48_v29 = vld [vmem:[#allocation4] sm:$0xff] }
  0x2f   :  { %v728_v6 = vld [vmem:[#allocation2] sm:$0xff]  ;;  %p619_p5 = por %p618_p4, %p617_p3 }
  0x30   :  { %v147_v7 = vsel %vm45_vm0, %v728_v6, -inf }
  0x31   :  { %148 = vmax.xlane.f32.xlu0 %v147_v7  ;;  %p620_p6 = pnand %p619_p5, %p613_p2 }
  0x33   :  { %531 = vmatpush3.bf16.xpose.msra.mxu0 %v530_v10 }
  0x34   :  { %532 = vmatprep.subr.bf16.mxu0 %v668_v0 }
  0x3b   :  { %534 = vmatpush3.bf16.xpose.msra.mxu0 %v533_v13 }
  0x3c   :  { %535 = vmatprep.subr.bf16.mxu0 %v668_v0 }
  0x43   :  { %537 = vmatpush3.bf16.xpose.msra.mxu0 %v536_v16 }
  0x44   :  { %538 = vmatprep.subr.bf16.mxu0 %v668_v0 }
  0x4b   :  { %540 = vmatpush3.bf16.xpose.msra.mxu0 %v539_v19 }
  0x4c   :  { %541 = vmatprep.subr.bf16.mxu0 %v668_v0 }
  0x53   :  { %543 = vmatpush3.bf16.xpose.msra.mxu0 %v542_v22 }
  0x54   :  { %544 = vmatprep.subr.bf16.mxu0 %v668_v0 }
  0x5b   :  { %546 = vmatpush3.bf16.xpose.msra.mxu0 %v545_v25 }
  0x5c   :  { %547 = vmatprep.subr.bf16.mxu0 %v668_v0 }
  0x63   :  { %549 = vmatpush3.bf16.xpose.msra.mxu0 %v548_v28 }
  0x6a   :  { %524 = vmatmul.mubr.f32.vlgmr.msra.gmra.mrb[0].mxu0 %v48_v29 }
  0xbe   :  { %v734_v32 = vpop.xlane.xlu0 %148 }
  0xbf   :  { %vm175_vm2 = vcmp.eq.f32.partialorder %v728_v6, %v734_v32 }
  0xc0   :  { %v176_v33 = vsel %vm175_vm2, %v732_v31, 4 }
  0xc1   :  { %v177_v34 = vsel %vm45_vm0, %v176_v33, 2147483647 }
  0xc2   :  { %v179_v35 = vshra.s32 %v177_v34, 16  ;;  %v178_v40 = vand.u32 65535, %v177_v34 }
  0xc4   :  { %v181_v36 = vcvt.s32.f32 %v179_v35  ;;  %v180_v42 = vcvt.s32.f32 %v178_v40 }
  0xc6   :  { %182 = vmin.xlane.f32.xlu0 %v181_v36 }
 0x13d   :  { %v131_v37 = vpop.f32.mrb[0].mxu0 }
 0x13e   :  { %v141_v38 = vsel %vm140_vm3, %v131_v37, -inf  ;;  %v525_v39 = vpop.f32.mrb[1].mxu0 }
 0x13f   :  { %144 = vmax.xlane.f32.xlu1 %v141_v38 }
 0x153   :  { %v183_v41 = vpop.xlane.xlu0 %182 }
 0x154   :  { %vm184_vm4 = vcmp.eq.f32.partialorder %v181_v36, %v183_v41  ;;  %v189_v49 = vcvt.f32.s32 %v183_v41 }
 0x155   :  { %v185_v43 = vsel %vm184_vm4, %v180_v42, inf }
 0x156   :  { %186 = vmin.xlane.f32.xlu1 %v185_v43  ;;  %v190_v51 = vshll.u32 %v189_v49, 16 }
 0x1cc   :  { %v742_v45 = vpop.xlane.xlu1 %144 }
 0x1cd   :  { %vm152_vm5 = vcmp.eq.f32.partialorder %v141_v38, %v742_v45  ;;  %vm150_vm6 = vcmp.ge.f32.partialorder %v734_v32, %v742_v45 }
 0x1ce   :  { %v153_v46 = vsel %vm152_vm5, %v732_v31, 128  ;;  %vm169_vm13 = vmxor %vm150_vm6, %vm673_vm12 }
 0x1cf   :  { %v155_v47 = vshra.s32 %v153_v46, 16  ;;  %v154_v56 = vand.u32 65535, %v153_v46 }
 0x1d1   :  { %v157_v48 = vcvt.s32.f32 %v155_v47  ;;  %v156_v58 = vcvt.s32.f32 %v154_v56 }
 0x1d3   :  { %158 = vmin.xlane.f32.xlu0 %v157_v48 }
 0x1e3   :  { %v187_v50 = vpop.xlane.xlu1 %186 }
 0x1e4   :  { %v188_v52 = vcvt.f32.s32 %v187_v50 }
 0x1e6   :  { %v746_v53 = vadd.s32 %v190_v51, %v188_v52 }
 0x1e8   :  { %vm192_vm7 = vcmp.eq.s32.totalorder %v732_v31, %v746_v53 }
 0x1e9   :  { %vm195_vm8 = vmand %vm192_vm7, %vm150_vm6 }
 0x1ea   :  { %v196_v54 = vsel %vm195_vm8, -inf, %v728_v6 }
 0x1eb   :  { %v216_v55 = vsel %vm45_vm0, %v196_v54, -inf }
 0x1ec   :  { %217 = vmax.xlane.f32.xlu1 %v216_v55 }
 0x260   :  { %v159_v57 = vpop.xlane.xlu0 %158 }
 0x261   :  { %vm160_vm9 = vcmp.eq.f32.partialorder %v157_v48, %v159_v57  ;;  %v165_v1 = vcvt.f32.s32 %v159_v57 }
 0x262   :  { %v161_v59 = vsel %vm160_vm9, %v156_v58, inf }
 0x263   :  { %162 = vmin.xlane.f32.xlu0 %v161_v59  ;;  %v166_v3 = vshll.u32 %v165_v1, 16 }
 0x279   :  { %v760_v60 = vpop.xlane.xlu1 %217 }
 0x27a   :  { %vm244_vm10 = vcmp.eq.f32.partialorder %v196_v54, %v760_v60 }
 0x27b   :  { %v245_v61 = vsel %vm244_vm10, %v732_v31, 4 }
 0x27c   :  { %v246_v62 = vsel %vm45_vm0, %v245_v61, 2147483647 }
 0x27d   :  { %v248_v63 = vshra.s32 %v246_v62, 16  ;;  %v247_v7 = vand.u32 65535, %v246_v62 }
 0x27f   :  { %v250_v0 = vcvt.s32.f32 %v248_v63  ;;  %v249_v9 = vcvt.s32.f32 %v247_v7 }
 0x281   :  { %251 = vmin.xlane.f32.xlu1 %v250_v0 }
 0x2f0   :  { %v163_v2 = vpop.xlane.xlu0 %162 }
 0x2f1   :  { %v164_v4 = vcvt.f32.s32 %v163_v2 }
 0x2f3   :  { %v765_v5 = vadd.s32 %v166_v3, %v164_v4 }
 0x2f5   :  { %vm168_vm11 = vcmp.eq.s32.totalorder %v732_v31, %v765_v5 }
 0x2f6   :  { %vm172_vm14 = vmand %vm168_vm11, %vm169_vm13 }
 0x2f7   :  { %v173_v6 = vsel %vm172_vm14, -inf, %v141_v38 }
 0x2f8   :  { %214 = vmax.xlane.f32.xlu0 %v173_v6 }
 0x30e   :  { %v252_v8 = vpop.xlane.xlu1 %251 }
 0x30f   :  { %vm253_vm15 = vcmp.eq.f32.partialorder %v250_v0, %v252_v8  ;;  %v258_v15 = vcvt.f32.s32 %v252_v8 }
 0x310   :  { %v254_v10 = vsel %vm253_vm15, %v249_v9, inf  ;;  %v143_v9 = vld [vmem:[#allocation3] sm:$0xff] }
 0x311   :  { %255 = vmin.xlane.f32.xlu1 %v254_v10  ;;  %v259_v17 = vshll.u32 %v258_v15, 16  ;;  %v197_v10 = vsel %vm192_vm7, %v143_v9, 4294967295  ;;  %vm411_vm7 = vcmask 7168  }
 0x385   :  { %v773_v11 = vpop.xlane.xlu0 %214 }
 0x386   :  { %vm221_vm1 = vcmp.eq.f32.partialorder %v173_v6, %v773_v11  ;;  %vm219_vm2 = vcmp.ge.f32.partialorder %v760_v60, %v773_v11 }
 0x387   :  { %v222_v12 = vsel %vm221_vm1, %v732_v31, 128  ;;  %vm238_vm10 = vmxor %vm219_vm2, %vm673_vm12  ;;  %v220_v53 = vsel %vm219_vm2, %v760_v60, %v773_v11 }
 0x388   :  { %v224_v13 = vshra.s32 %v222_v12, 16  ;;  %v223_v22 = vand.u32 65535, %v222_v12 }
 0x38a   :  { %v226_v14 = vcvt.s32.f32 %v224_v13  ;;  %v225_v24 = vcvt.s32.f32 %v223_v22  ;;  %v198_v13 = vsel %vm45_vm0, %v197_v10, 2147483648 }
 0x38c   :  { %227 = vmin.xlane.f32.xlu0 %v226_v14 }
 0x39e   :  { %v256_v16 = vpop.xlane.xlu1 %255 }
 0x39f   :  { %v257_v18 = vcvt.f32.s32 %v256_v16 }
 0x3a1   :  { %v777_v19 = vadd.s32 %v259_v17, %v257_v18  ;;  %v200_v17 = vshra.s32 %v198_v13, 16 }
 0x3a3   :  { %vm261_vm3 = vcmp.eq.s32.totalorder %v732_v31, %v777_v19 }
 0x3a4   :  { %vm264_vm4 = vmand %vm261_vm3, %vm219_vm2 }
 0x3a5   :  { %v265_v20 = vsel %vm264_vm4, -inf, %v196_v54 }
 0x3a6   :  { %v285_v21 = vsel %vm45_vm0, %v265_v20, -inf }
 0x3a7   :  { %286 = vmax.xlane.f32.xlu1 %v285_v21  ;;  %v202_v21 = vcvt.s32.f32 %v200_v17 }
 0x419   :  { %v228_v23 = vpop.xlane.xlu0 %227 }
 0x41a   :  { %vm229_vm5 = vcmp.eq.f32.partialorder %v226_v14, %v228_v23  ;;  %v234_v33 = vcvt.f32.s32 %v228_v23 }
 0x41b   :  { %v230_v25 = vsel %vm229_vm5, %v225_v24, inf }
 0x41c   :  { %231 = vmin.xlane.f32.xlu0 %v230_v25  ;;  %v235_v35 = vshll.u32 %v234_v33, 16  ;;  %v151_v25 = vsel %vm150_vm6, %v734_v32, %v742_v45 }
 0x434   :  { %v790_v26 = vpop.xlane.xlu1 %286 }
 0x435   :  { %vm313_vm8 = vcmp.eq.f32.partialorder %v265_v20, %v790_v26 }
 0x436   :  { %v314_v27 = vsel %vm313_vm8, %v732_v31, 4 }
 0x437   :  { %v315_v28 = vsel %vm45_vm0, %v314_v27, 2147483647 }
 0x438   :  { %v317_v29 = vshra.s32 %v315_v28, 16  ;;  %v316_v39 = vand.u32 65535, %v315_v28  ;;  %v412_v28 = vsel %vm411_vm7, %v151_v25, %v220_v53 }
 0x43a   :  { %v319_v30 = vcvt.s32.f32 %v317_v29  ;;  %v318_v41 = vcvt.s32.f32 %v316_v39 }
 0x43c   :  { %320 = vmin.xlane.f32.xlu1 %v319_v30 }
 0x4a9   :  { %v232_v34 = vpop.xlane.xlu0 %231 }
 0x4aa   :  { %v233_v36 = vcvt.f32.s32 %v232_v34 }
 0x4ac   :  { %v795_v37 = vadd.s32 %v235_v35, %v233_v36  ;;  %v266_v36 = vsel %vm261_vm3, %v143_v9, 4294967295 }
 0x4ad   :  { %v267_v39 = vsel %vm45_vm0, %v266_v36, 2147483648 }
 0x4ae   :  { %vm237_vm9 = vcmp.eq.s32.totalorder %v732_v31, %v795_v37 }
 0x4af   :  { %vm241_vm11 = vmand %vm237_vm9, %vm238_vm10 }
 0x4b0   :  { %v242_v38 = vsel %vm241_vm11, -inf, %v173_v6 }
 0x4b1   :  { %283 = vmax.xlane.f32.xlu0 %v242_v38 }
 0x4c9   :  { %v321_v40 = vpop.xlane.xlu1 %320 }
 0x4ca   :  { %vm322_vm13 = vcmp.eq.f32.partialorder %v319_v30, %v321_v40  ;;  %v327_v48 = vcvt.f32.s32 %v321_v40 }
 0x4cb   :  { %v323_v42 = vsel %vm322_vm13, %v318_v41, inf }
 0x4cc   :  { %324 = vmin.xlane.f32.xlu1 %v323_v42  ;;  %v328_v50 = vshll.u32 %v327_v48, 16 }
 0x53e   :  { %v803_v43 = vpop.xlane.xlu0 %283 }
 0x53f   :  { %vm290_vm14 = vcmp.eq.f32.partialorder %v242_v38, %v803_v43  ;;  %vm288_vm15 = vcmp.ge.f32.partialorder %v790_v26, %v803_v43 }
 0x540   :  { %v291_v44 = vsel %vm290_vm14, %v732_v31, 128  ;;  %vm307_vm10 = vmxor %vm288_vm15, %vm673_vm12  ;;  %vm413_vm12 = vcmask 15360   ;;  %v289_v24 = vsel %vm288_vm15, %v790_v26, %v803_v43  ;;  %vm415_vm14 = vcmask 23552  }
 0x541   :  { %v293_v46 = vshra.s32 %v291_v44, 16  ;;  %v292_v56 = vand.u32 65535, %v291_v44  ;;  %v414_v29 = vsel %vm413_vm12, %v412_v28, %v289_v24 }
 0x543   :  { %v295_v47 = vcvt.s32.f32 %v293_v46  ;;  %v294_v58 = vcvt.s32.f32 %v292_v56  ;;  %v269_v46 = vshra.s32 %v267_v39, 16  ;;  %v199_v56 = vand.u32 65535, %v198_v13 }
 0x545   :  { %296 = vmin.xlane.f32.xlu0 %v295_v47  ;;  %v271_v19 = vcvt.s32.f32 %v269_v46 }
 0x559   :  { %v325_v49 = vpop.xlane.xlu1 %324 }
 0x55a   :  { %v326_v51 = vcvt.f32.s32 %v325_v49 }
 0x55c   :  { %v329_v52 = vadd.s32 %v328_v50, %v326_v51 }
 0x55e   :  { %vm330_vm1 = vcmp.eq.s32.totalorder %v732_v31, %v329_v52 }
 0x55f   :  { %vm333_vm4 = vmand %vm330_vm1, %vm288_vm15  ;;  %v335_v14 = vsel %vm330_vm1, %v143_v9, 4294967295 }
 0x560   :  { %v334_v54 = vsel %vm333_vm4, -inf, %v265_v20  ;;  %v336_v20 = vsel %vm45_vm0, %v335_v14, 2147483648 }
 0x561   :  { %v354_v55 = vsel %vm45_vm0, %v334_v54, -inf  ;;  %v338_v22 = vshra.s32 %v336_v20, 16 }
 0x562   :  { %355 = vmax.xlane.f32.xlu1 %v354_v55 }
 0x563   :  { %v340_v23 = vcvt.s32.f32 %v338_v22 }
 0x5d2   :  { %v297_v57 = vpop.xlane.xlu0 %296 }
 0x5d3   :  { %vm298_vm5 = vcmp.eq.f32.partialorder %v295_v47, %v297_v57  ;;  %v303_v2 = vcvt.f32.s32 %v297_v57 }
 0x5d4   :  { %v299_v59 = vsel %vm298_vm5, %v294_v58, inf }
 0x5d5   :  { %300 = vmin.xlane.f32.xlu0 %v299_v59  ;;  %v304_v4 = vshll.u32 %v303_v2, 16 }
 0x5ef   :  { %v816_v61 = vpop.xlane.xlu1 %355 }
 0x5f0   :  { %vm376_vm8 = vcmp.eq.f32.partialorder %v334_v54, %v816_v61 }
 0x5f1   :  { %v377_v62 = vsel %vm376_vm8, %v732_v31, 4 }
 0x5f2   :  { %v378_v63 = vsel %vm45_vm0, %v377_v62, 2147483647  ;;  %v201_v62 = vcvt.s32.f32 %v199_v56 }
 0x5f3   :  { %v380_v0 = vshra.s32 %v378_v63, 16  ;;  %v379_v12 = vand.u32 65535, %v378_v63  ;;  %v337_v63 = vand.u32 65535, %v336_v20 }
 0x5f5   :  { %v382_v1 = vcvt.s32.f32 %v380_v0  ;;  %v381_v16 = vcvt.s32.f32 %v379_v12 }
 0x5f7   :  { %383 = vmin.xlane.f32.xlu1 %v382_v1 }
 0x662   :  { %v301_v3 = vpop.xlane.xlu0 %300 }
 0x663   :  { %v302_v6 = vcvt.f32.s32 %v301_v3  ;;  %v268_v3 = vand.u32 65535, %v267_v39 }
 0x665   :  { %v821_v7 = vadd.s32 %v304_v4, %v302_v6 }
 0x667   :  { %vm306_vm9 = vcmp.eq.s32.totalorder %v732_v31, %v821_v7 }
 0x668   :  { %vm310_vm11 = vmand %vm306_vm9, %vm307_vm10 }
 0x669   :  { %v311_v8 = vsel %vm310_vm11, -inf, %v242_v38 }
 0x66a   :  { %352 = vmax.xlane.f32.xlu0 %v311_v8 }
 0x684   :  { %v384_v15 = vpop.xlane.xlu1 %383 }
 0x685   :  { %vm385_vm13 = vcmp.eq.f32.partialorder %v382_v1, %v384_v15  ;;  %v390_v38 = vcvt.f32.s32 %v384_v15 }
 0x686   :  { %v386_v18 = vsel %vm385_vm13, %v381_v16, inf }
 0x687   :  { %387 = vmin.xlane.f32.xlu1 %v386_v18  ;;  %v391_v42 = vshll.u32 %v390_v38, 16 }
 0x68b   :  { %203 = vmax.xlane.f32.xlu1 %v202_v21 }
 0x68f   :  { %341 = vmax.xlane.f32.xlu1 %v340_v23 }
 0x6f7   :  { %v851_v27 = vpop.xlane.xlu0 %352 }
 0x6f8   :  { %vm357_vm1 = vcmp.ge.f32.partialorder %v816_v61, %v851_v27  ;;  %vm359_vm4 = vcmp.eq.f32.partialorder %v311_v8, %v851_v27 }
 0x6f9   :  { %v358_v30 = vsel %vm357_vm1, %v816_v61, %v851_v27  ;;  %v360_v48 = vsel %vm359_vm4, %v732_v31, 128 }
 0x6fa   :  { %v416_v33 = vsel %vm415_vm14, %v414_v29, %v358_v30  ;;  %v362_v50 = vshra.s32 %v360_v48, 16  ;;  %v361_v10 = vand.u32 65535, %v360_v48 }
 0x6fb   :  { %417 = vst.msk [vmem:[#allocation2] sm:$0xff] %vm45_vm0, %v416_v33 }
 0x6fc   :  { %v364_v57 = vcvt.s32.f32 %v362_v50  ;;  %v363_v15 = vcvt.s32.f32 %v361_v10 }
 0x702   :  { %v425_v34 = vld [vmem:[#allocation2] sm:$0xff] }
 0x703   :  { %v426_v35 = vmul.f32 1.442695, %v425_v34 }
 0x705   :  { %562 = vpow2.f32 %v426_v35 }
 0x70f   :  { %v563_v41 = vpop.eup %562 }
 0x710   :  { %v428_v47 = vsel %vm45_vm0, %v563_v41, -inf }
 0x711   :  { %429 = vmax.xlane.f32.xlu0 %v428_v47 }
 0x714   :  { %v388_v40 = vpop.xlane.xlu1 %387 }
 0x715   :  { %v389_v44 = vcvt.f32.s32 %v388_v40  ;;  %272 = vmax.xlane.f32.xlu0 %v271_v19 }
 0x717   :  { %v392_v49 = vadd.s32 %v391_v42, %v389_v44 }
 0x718   :  { %v204_v51 = vpop.xlane.xlu1 %203 }
 0x719   :  { %vm393_vm5 = vcmp.eq.s32.totalorder %v732_v31, %v392_v49  ;;  %365 = vmin.xlane.f32.xlu0 %v364_v57  ;;  %vm205_vm3 = vcmp.eq.f32.partialorder %v202_v21, %v204_v51  ;;  %v339_v31 = vcvt.s32.f32 %v337_v63  ;;  %v210_v53 = vcvt.f32.s32 %v204_v51 }
 0x71a   :  { %v394_v52 = vsel %vm393_vm5, %v143_v9, 4294967295  ;;  %v206_v0 = vsel %vm205_vm3, %v201_v62, -inf  ;;  %v270_v9 = vcvt.s32.f32 %v268_v3 }
 0x71b   :  { %v395_v54 = vsel %vm45_vm0, %v394_v52, 2147483648  ;;  %v211_v29 = vshll.u32 %v210_v53, 16 }
 0x71c   :  { %v397_v55 = vshra.s32 %v395_v54, 16  ;;  %v342_v59 = vpop.xlane.xlu1 %341  ;;  %v396_v12 = vand.u32 65535, %v395_v54 }
 0x71d   :  { %207 = vmax.xlane.f32.xlu0 %v206_v0  ;;  %vm343_vm8 = vcmp.eq.f32.partialorder %v340_v23, %v342_v59  ;;  %v348_v30 = vcvt.f32.s32 %v342_v59 }
 0x71e   :  { %v399_v58 = vcvt.s32.f32 %v397_v55  ;;  %v344_v1 = vsel %vm343_vm8, %v339_v31, -inf  ;;  %v398_v17 = vcvt.s32.f32 %v396_v12 }
 0x720   :  { %400 = vmax.xlane.f32.xlu1 %v399_v58 }
 0x721   :  { %345 = vmax.xlane.f32.xlu0 %v344_v1 }
 0x79e   :  { %v430_v2 = vpop.xlane.xlu0 %429 }
 0x79f   :  { %v431_v4 = vsub.f32 %v563_v41, %v430_v2  ;;  %v349_v41 = vshll.u32 %v348_v30, 16 }
 0x7a1   :  { %v432_v6 = vmul.f32 1.442695, %v431_v4 }
 0x7a2   :  { %v273_v8 = vpop.xlane.xlu0 %272 }
 0x7a3   :  { %564 = vpow2.f32 %v432_v6  ;;  %vm274_vm9 = vcmp.eq.f32.partialorder %v271_v19, %v273_v8  ;;  %v279_v24 = vcvt.f32.s32 %v273_v8 }
 0x7a4   :  { %v275_v13 = vsel %vm274_vm9, %v270_v9, -inf }
 0x7a5   :  { %276 = vmax.xlane.f32.xlu1 %v275_v13  ;;  %v280_v35 = vshll.u32 %v279_v24, 16 }
 0x7a6   :  { %v366_v14 = vpop.xlane.xlu0 %365 }
 0x7a7   :  { %vm367_vm10 = vcmp.eq.f32.partialorder %v364_v57, %v366_v14  ;;  %v372_v33 = vcvt.f32.s32 %v366_v14 }
 0x7a8   :  { %v368_v18 = vsel %vm367_vm10, %v363_v15, inf }
 0x7a9   :  { %369 = vmin.xlane.f32.xlu1 %v368_v18  ;;  %v373_v44 = vshll.u32 %v372_v33, 16 }
 0x7aa   :  { %v208_v23 = vpop.xlane.xlu0 %207 }
 0x7ab   :  { %v209_v25 = vcvt.f32.s32 %v208_v23 }
 0x7ad   :  { %v401_v16 = vpop.xlane.xlu1 %400  ;;  %v565_v21 = vpop.eup %564  ;;  %v212_v36 = vadd.s32 %v211_v29, %v209_v25 }
 0x7ae   :  { %vm402_vm11 = vcmp.eq.f32.partialorder %v399_v58, %v401_v16  ;;  %v434_v22 = vsel %vm45_vm0, %v565_v21, 0.0  ;;  %v346_v28 = vpop.xlane.xlu0 %345  ;;  %v407_v40 = vcvt.f32.s32 %v401_v16 }
 0x7af   :  { %v403_v20 = vsel %vm402_vm11, %v398_v17, -inf  ;;  %435 = vadd.xlane.f32.xlu1 %v434_v22  ;;  %v347_v38 = vcvt.f32.s32 %v346_v28  ;;  %v213_v47 = vsel %vm150_vm6, %v212_v36, %v765_v5 }
 0x7b0   :  { %404 = vmax.xlane.f32.xlu0 %v403_v20  ;;  %v408_v51 = vshll.u32 %v407_v40, 16 }
 0x7b1   :  { %v350_v48 = vadd.s32 %v349_v41, %v347_v38 }
 0x7b3   :  { %v351_v32 = vsel %vm288_vm15, %v350_v48, %v821_v7 }
 0x832   :  { %v277_v34 = vpop.xlane.xlu1 %276 }
 0x833   :  { %v278_v39 = vcvt.f32.s32 %v277_v34 }
 0x835   :  { %v281_v42 = vadd.s32 %v280_v35, %v278_v39 }
 0x836   :  { %v370_v46 = vpop.xlane.xlu1 %369 }
 0x837   :  { %v282_v49 = vsel %vm219_vm2, %v281_v42, %v795_v37  ;;  %v371_v19 = vcvt.f32.s32 %v370_v46 }
 0x838   :  { %v418_v52 = vsel %vm411_vm7, %v213_v47, %v282_v49 }
 0x839   :  { %v374_v55 = vadd.s32 %v373_v44, %v371_v19  ;;  %v419_v45 = vsel %vm413_vm12, %v418_v52, %v351_v32 }
 0x83c   :  { %v436_v5 = vpop.xlane.xlu1 %435 }
 0x83d   :  { %v405_v50 = vpop.xlane.xlu0 %404  ;;  %566 = vrcp.f32 %v436_v5 }
 0x83e   :  { %v406_v54 = vcvt.f32.s32 %v405_v50 }
 0x840   :  { %v409_v56 = vadd.s32 %v408_v51, %v406_v54 }
 0x842   :  { %v410_v60 = vsel %vm357_vm1, %v409_v56, %v374_v55 }
 0x843   :  { %v420_v11 = vsel %vm415_vm14, %v419_v45, %v410_v60 }
 0x844   :  { %421 = vst.msk [vmem:[#allocation3] sm:$0xff] %vm45_vm0, %v420_v11 }
 0x847   :  { %v567_v43 = vpop.eup %566 }
 0x848   :  { %v438_v7 = vmul.f32 %v567_v43, %v565_v21 }
 0x84b   :  { %v440_v37 = vld [vmem:[#allocation3] sm:$0xff] }
 0x84c   :  { %v441_v26 = vsel %vm45_vm0, %v440_v37, 0 }
 0x84d   :  { %443 = vst [vmem:[#allocation10] sm:$0xff] %v441_v26 }
 0x84e   :  { %623 = shalt.err (!%p620_p6)
}
 0x84f   :  { %s624_s16 = scalar_lea.hbm %s922_s3, 128 }
 0x850   :  { %p625_p7 = scmp.ne.s32.totalorder %s922_s3, %s624_s16  ;;  %p628_p8 = scmp.lt.u32.totalorder %s624_s16, %s922_s3 }
 0x852   :  { %p630_p9 = pnand %p628_p8, %p625_p7 }
 0x854   :  { %633 = shalt.err (!%p630_p9)
}
 0x855   :  { %463 = dma.vmem_to_hbm [thread:$0]  %s461_s10, 128, %s922_s3, [#allocation11]   ;;  %v439_v61 = vsel %vm45_vm0, %v438_v7, 0.0 }
 0x856   :  { %442 = vst [vmem:[#allocation9] sm:$0xff] %v439_v61  ;;  %s634_s23 = scalar_lea.vmem %s451_s12, 128  ;;  %p639_p11 = scmp.lt.s32.totalorder %s451_s12, %s451_s12 }
 0x857   :  { %p635_p10 = scmp.ne.s32.totalorder %s451_s12, %s634_s23  ;;  %p640_p12 = scmp.lt.s32.totalorder %s634_s23, %s634_s23 }
 0x859   :  { %p641_p13 = por %p640_p12, %p639_p11 }
 0x85b   :  { %p642_p0 = pnand %p641_p13, %p635_p10 }
 0x85d   :  { %645 = shalt.err (!%p642_p0)
}
 0x85e   :  { %s646_s26 = scalar_lea.hbm %s921_s2, 128 }
 0x85f   :  { %p647_p1 = scmp.ne.s32.totalorder %s921_s2, %s646_s26  ;;  %p650_p2 = scmp.lt.u32.totalorder %s646_s26, %s921_s2 }
 0x861   :  { %p652_p3 = pnand %p650_p2, %p647_p1 }
 0x863   :  { %655 = shalt.err (!%p652_p3)
}
 0x864   :  { %453 = dma.vmem_to_hbm [thread:$0]  %s451_s12, 128, %s921_s2, [#allocation6]  }
 0x865   :  { %660 = dma.done.wait [#allocation6], 128  }
 0x866   :  { %661 = vsyncadd [#allocation6], 4294967168 }
 0x867   :  { %662 = dma.done.wait [#allocation11], 128  }
 0x868   :  { %663 = vsyncadd [#allocation11], 4294967168 }
 0x869   :  { %470 = vsyncpa [#allocation5], 1 }
 0x86a   :  { %471 = vsyncpa [#allocation8], 1 }
 0x86b   :  { %472 = vsyncpa [#allocation6], 1 }
 0x86c   :  { %473 = vsyncpa [#allocation11], 1 }

</bundles_post_ra>
